<compile_context>
chip_gen: v7x
topology: tpu7x:2x2x1
jax: 0.10.0
libtpu: 0.0.40
codegen_flags: <defaults>
</compile_context>

<pallas_src>
import functools
import math

import jax
import jax.numpy as jnp
from jax.experimental import pallas as pl
from jax.experimental.pallas import tpu as pltpu


LANE = 128                      # vreg lane width
_MAX_TILE_LANES = 128 * 1024    # cap on the pixel-tile width (lanes)
_TARGET_STEP_BYTES = 4 << 20    # aim for >= ~4 MiB of input per grid step
_MIN_STEP_BYTES = 1 << 20       # don't shrink tiles below ~1 MiB/step payload


def _round_up(x, m):
    return ((x + m - 1) // m) * m


def _cdiv(a, b):
    return -(-a // b)


def _vmem_budget_bytes():
    """(live tile-buffer budget, vmem_limit_bytes) from the actual chip."""
    try:
        cap = int(pltpu.get_tpu_info().vmem_capacity_bytes)
        if cap <= 0:
            raise ValueError
    except Exception:
        cap = 64 * 1024 * 1024      # conservative fallback: v7x per-TC VMEM
    return cap // 2, int(cap * 0.85)


def _choose_tiling(N, C, HW, itemsize):
    """Pick (batch block Bn, pixel tile T, vmem_limit) from a VMEM model that
    counts real sublane padding and double buffering."""
    hw_pad = _round_up(HW, LANE)
    # Sublane padding: f32 rounds C up to 8 rows per buffer, bf16 to 16, i8 to 32.
    c_pad = _round_up(C, max(8, 32 // itemsize))
    budget, vmem_limit = _vmem_budget_bytes()

    # Double-buffered input bytes per pixel lane per image: 2 inputs x 2 bufs.
    per_lane = 2 * 2 * c_pad * itemsize
    # Two tiny (1,1,1,128) outputs pad to 8 sublanes each, double buffered.
    out_bufs = 2 * 2 * 8 * LANE * 4
    avail = max(budget - out_bufs, per_lane * LANE)

    tile = (avail // per_lane) // LANE * LANE
    tile = max(LANE, min(tile, hw_pad, _MAX_TILE_LANES))

    # Small-image case: one pixel tile covers the whole image but only moves a
    # few KiB -> block over batch too so each grid step has a real payload.
    bn = 1
    step_bytes = 2 * c_pad * tile * itemsize
    if tile >= hw_pad and step_bytes < _TARGET_STEP_BYTES and N > 1:
        bn = min(N, max(1, _TARGET_STEP_BYTES // max(step_bytes, 1)))
        bn = max(1, min(bn, avail // (per_lane * tile)))

    # Keep a few grid steps on a parallel axis (v7x: 2 TensorCores) as long as
    # each step still moves >= ~1 MiB of input.
    n_steps = _cdiv(N, bn) * _cdiv(hw_pad, tile)
    if n_steps < 4:
        min_tile = _round_up(
            max(LANE, _MIN_STEP_BYTES // (2 * c_pad * itemsize)), LANE)
        want_j = _cdiv(4, _cdiv(N, bn))
        t2 = _round_up(_cdiv(hw_pad, want_j), LANE)
        tile = max(LANE, min(tile, max(t2, min_tile), hw_pad))

    return int(bn), int(tile), int(vmem_limit)


# Abramowitz & Stegun 4.4.46 minimax poly: acos(x) = sqrt(1-x)*poly(x), x in
# [0,1], |err| <= 2e-8 (below f32 resolution for the SAM metric).
_ACOS_COEFFS = (
    -0.0012624911, 0.0066700901, -0.0170881256, 0.0308918810,
    -0.0501743046, 0.0889789874, -0.2145988016, 1.5707963050,
)


def _acos(x):
    """Elementwise arccos (VPU FMAs + one EUP sqrt). NaN for |x|>1 / NaN in,
    matching torch.acos / jnp.arccos semantics used by the reference."""
    ax = jnp.abs(x)
    p = jnp.float32(_ACOS_COEFFS[0])
    for c in _ACOS_COEFFS[1:]:
        p = p * ax + jnp.float32(c)
    r = jnp.sqrt(jnp.float32(1.0) - ax) * p          # NaN when |x| > 1
    return jnp.where(x < 0, jnp.float32(math.pi) - r, r)


def _sam_partial_kernel(gt_ref, pred_ref, sum_ref, cnt_ref, *, n_total, hw_total):
    """One (Bn, C, T) tile -> partial (sum of valid angles, valid count)."""
    n_idx = pl.program_id(0)
    j_idx = pl.program_id(1)
    bn, _, tile = gt_ref.shape

    g = gt_ref[...].astype(jnp.float32)               # (Bn, C, T)
    p = pred_ref[...].astype(jnp.float32)

    inner = jnp.sum(g * p, axis=1, keepdims=True)     # (Bn, 1, T)
    gg = jnp.sum(g * g, axis=1, keepdims=True)
    pp = jnp.sum(p * p, axis=1, keepdims=True)

    # rsqrt(gg)*rsqrt(pp) (NOT rsqrt(gg*pp)): avoids under/overflow of the
    # product. Zero-norm pixels give 0*inf = NaN, like the reference's 0/0.
    cos = inner * (jax.lax.rsqrt(gg) * jax.lax.rsqrt(pp))
    ang = _acos(cos)                                  # (Bn, 1, T), in [0,pi] or NaN

    # Mask lanes past H*W (ragged last pixel tile fetched by the masked edge
    # DMA) and rows past N (ragged last batch block).
    lane = jax.lax.broadcasted_iota(jnp.int32, ang.shape, 2) + j_idx * tile
    row = jax.lax.broadcasted_iota(jnp.int32, ang.shape, 0) + n_idx * bn
    in_bounds = jnp.logical_and(lane < hw_total, row < n_total)
    valid = jnp.logical_and(in_bounds, jnp.logical_not(jnp.isnan(ang)))

    ang_sum = jnp.sum(jnp.where(valid, ang, jnp.float32(0.0)))
    cnt_sum = jnp.sum(valid.astype(jnp.float32))

    sum_ref[...] = jnp.full(sum_ref.shape, ang_sum, jnp.float32)
    cnt_ref[...] = jnp.full(cnt_ref.shape, cnt_sum, jnp.float32)


def _sam_partials_pallas(gt3, pr3, bn, tile, vmem_limit):
    """gt3, pr3: (N, C, HW). Returns (sums, counts) of shape (NB, JB, 1, 128)."""
    N, C, HW = gt3.shape
    nb_n = _cdiv(N, bn)
    nb_j = _cdiv(HW, tile)
    itemsize = jnp.dtype(gt3.dtype).itemsize

    kernel = functools.partial(_sam_partial_kernel, n_total=N, hw_total=HW)

    cost = pl.CostEstimate(
        flops=int(N * HW * (6 * C + 24)),
        transcendentals=int(3 * N * HW),
        bytes_accessed=int(2 * N * C * HW * itemsize
                           + nb_n * nb_j * 2 * LANE * 4),
    )

    out_shape = jax.ShapeDtypeStruct((nb_n, nb_j, 1, LANE), jnp.float32)

    return pl.pallas_call(
        kernel,
        out_shape=(out_shape, out_shape),
        grid_spec=pltpu.PrefetchScalarGridSpec(
            num_scalar_prefetch=0,
            grid=(nb_n, nb_j),
            in_specs=[
                pl.BlockSpec((bn, C, tile), lambda n, j: (n, 0, j)),
                pl.BlockSpec((bn, C, tile), lambda n, j: (n, 0, j)),
            ],
            out_specs=[
                pl.BlockSpec((1, 1, 1, LANE), lambda n, j: (n, j, 0, 0)),
                pl.BlockSpec((1, 1, 1, LANE), lambda n, j: (n, j, 0, 0)),
            ],
        ),
        compiler_params=pltpu.CompilerParams(
            dimension_semantics=("parallel", "parallel"),
            vmem_limit_bytes=vmem_limit,
        ),
        cost_estimate=cost,
    )(gt3, pr3)


def spectral_angle_mapper(gt, pred, unit: str = "rad"):
    """Matches SpectralAngleMapper.forward(gt, pred) from the PyTorch module.

    gt, pred: (N, C, H, W) arrays (f32 or bf16). Returns a float32 scalar.
    """
    assert gt.shape == pred.shape and gt.ndim == 4
    N, C, H, W = gt.shape
    HW = H * W

    # NCHW-native: free reshape, no transpose, no pad copy in the wrapper.
    gt3 = gt.reshape(N, C, HW)
    pr3 = pred.reshape(N, C, HW)

    bn, tile, vmem_limit = _choose_tiling(N, C, HW, jnp.dtype(gt3.dtype).itemsize)
    sums, cnts = _sam_partials_pallas(gt3, pr3, bn, tile, vmem_limit)

    # Finish the tiny (grid-sized) reduction; NaN pixels already excluded.
    total = jnp.sum(sums[:, :, 0, 0])
    count = jnp.sum(cnts[:, :, 0, 0])
    mean_rad = total / count
    if unit == "degree":
        return mean_rad * jnp.float32(180.0 / math.pi)
    return mean_rad


def _reference_sam(gt, pred, unit: str = "rad"):
    """Pure-JAX reference mirroring the PyTorch forward, for verification."""
    inner = jnp.sum(gt * pred, axis=1)
    ng = jnp.sqrt(jnp.sum(gt * gt, axis=1))
    npred = jnp.sqrt(jnp.sum(pred * pred, axis=1))
    ang = jnp.arccos(inner / (ng * npred))
    if unit == "degree":
        ang = ang * (180.0 / math.pi)
    valid = jnp.logical_not(jnp.isnan(ang))
    return jnp.sum(jnp.where(valid, ang, 0.0)) / jnp.sum(valid.astype(jnp.float32))


if __name__ == "__main__":
    key = jax.random.PRNGKey(0)
    k1, k2, k3, k4 = jax.random.split(key, 4)

    sam_fn = jax.jit(spectral_angle_mapper, static_argnames=("unit",))

    # Lane-aligned case (module-typical small shape).
    N, C, H, W = 2, 4, 16, 16
    gt = jax.random.uniform(k1, (N, C, H, W), dtype=jnp.float32)
    pred = jax.random.uniform(k2, (N, C, H, W), dtype=jnp.float32)

    sam_rad = jax.block_until_ready(sam_fn(gt, pred, unit="rad"))
    sam_deg = jax.block_until_ready(sam_fn(gt, pred, unit="degree"))
    ref_rad = jax.block_until_ready(_reference_sam(gt, pred, unit="rad"))
    ref_deg = jax.block_until_ready(_reference_sam(gt, pred, unit="degree"))
    assert jnp.allclose(sam_rad, ref_rad, rtol=1e-4, atol=1e-5), (sam_rad, ref_rad)
    assert jnp.allclose(sam_deg, ref_deg, rtol=1e-4, atol=1e-3), (sam_deg, ref_deg)

    # Ragged case: H*W not a multiple of 128 -> exercises masked edge tile.
    N2, C2, H2, W2 = 2, 3, 15, 17
    gt2 = jax.random.uniform(k3, (N2, C2, H2, W2), dtype=jnp.float32)
    pred2 = jax.random.uniform(k4, (N2, C2, H2, W2), dtype=jnp.float32)
    sam2 = jax.block_until_ready(sam_fn(gt2, pred2, unit="rad"))
    ref2 = jax.block_until_ready(_reference_sam(gt2, pred2, unit="rad"))
    assert jnp.allclose(sam2, ref2, rtol=1e-4, atol=1e-5), (sam2, ref2)

    print("KERNEL_OK")
</pallas_src>

<mosaic_0001>
module attributes {stable_mosaic.version = 11 : i64} {
  func.func @_sam_partial_kernel(%arg0: i32, %arg1: i32, %arg2: memref<2x4x256xf32, #tpu.memory_space<vmem>>, %arg3: memref<2x4x256xf32, #tpu.memory_space<vmem>>, %arg4: memref<1x1x1x128xf32, #tpu.memory_space<vmem>>, %arg5: memref<1x1x1x128xf32, #tpu.memory_space<vmem>>) attributes {dimension_semantics = [#tpu.dimension_semantics<parallel>, #tpu.dimension_semantics<parallel>], iteration_bounds = array<i64: 1, 1>, scalar_prefetch = 0 : i64, scratch_operands = 0 : i64, tpu.core_type = #tpu.core_type<tc>, window_params = [{transform_indices = @transform_0, window_bounds = array<i64: 2, 4, 256>}, {transform_indices = @transform_1, window_bounds = array<i64: 2, 4, 256>}, {transform_indices = @transform_2, window_bounds = array<i64: 1, 1, 1, 128>}, {transform_indices = @transform_3, window_bounds = array<i64: 1, 1, 1, 128>}]} {
    %c0 = arith.constant 0 : index
    %c0_0 = arith.constant 0 : index
    %c0_1 = arith.constant 0 : index
    %0 = vector.load %arg2[%c0, %c0_0, %c0_1] : memref<2x4x256xf32, #tpu.memory_space<vmem>>, vector<2x4x256xf32>
    %c0_2 = arith.constant 0 : index
    %c0_3 = arith.constant 0 : index
    %c0_4 = arith.constant 0 : index
    %1 = vector.load %arg3[%c0_2, %c0_3, %c0_4] : memref<2x4x256xf32, #tpu.memory_space<vmem>>, vector<2x4x256xf32>
    %2 = arith.mulf %0, %1 : vector<2x4x256xf32>
    %cst = arith.constant dense<0.000000e+00> : vector<2x256xf32>
    %3 = vector.multi_reduction <add>, %2, %cst [1] : vector<2x4x256xf32> to vector<2x256xf32>
    %4 = vector.shape_cast %3 : vector<2x256xf32> to vector<2x1x256xf32>
    %5 = arith.mulf %0, %0 : vector<2x4x256xf32>
    %cst_5 = arith.constant dense<0.000000e+00> : vector<2x256xf32>
    %6 = vector.multi_reduction <add>, %5, %cst_5 [1] : vector<2x4x256xf32> to vector<2x256xf32>
    %7 = vector.shape_cast %6 : vector<2x256xf32> to vector<2x1x256xf32>
    %8 = arith.mulf %1, %1 : vector<2x4x256xf32>
    %cst_6 = arith.constant dense<0.000000e+00> : vector<2x256xf32>
    %9 = vector.multi_reduction <add>, %8, %cst_6 [1] : vector<2x4x256xf32> to vector<2x256xf32>
    %10 = vector.shape_cast %9 : vector<2x256xf32> to vector<2x1x256xf32>
    %11 = math.rsqrt %7 : vector<2x1x256xf32>
    %12 = math.rsqrt %10 : vector<2x1x256xf32>
    %13 = arith.mulf %11, %12 : vector<2x1x256xf32>
    %14 = arith.mulf %4, %13 : vector<2x1x256xf32>
    %15 = math.absf %14 : vector<2x1x256xf32>
    %cst_7 = arith.constant -0.0012624911 : f32
    %16 = vector.broadcast %cst_7 : f32 to vector<2x1x256xf32>
    %17 = arith.mulf %16, %15 : vector<2x1x256xf32>
    %cst_8 = arith.constant 6.670090e-03 : f32
    %18 = vector.broadcast %cst_8 : f32 to vector<2x1x256xf32>
    %19 = arith.addf %17, %18 : vector<2x1x256xf32>
    %20 = arith.mulf %19, %15 : vector<2x1x256xf32>
    %cst_9 = arith.constant -0.0170881264 : f32
    %21 = vector.broadcast %cst_9 : f32 to vector<2x1x256xf32>
    %22 = arith.addf %20, %21 : vector<2x1x256xf32>
    %23 = arith.mulf %22, %15 : vector<2x1x256xf32>
    %cst_10 = arith.constant 0.0308918804 : f32
    %24 = vector.broadcast %cst_10 : f32 to vector<2x1x256xf32>
    %25 = arith.addf %23, %24 : vector<2x1x256xf32>
    %26 = arith.mulf %25, %15 : vector<2x1x256xf32>
    %cst_11 = arith.constant -0.0501743034 : f32
    %27 = vector.broadcast %cst_11 : f32 to vector<2x1x256xf32>
    %28 = arith.addf %26, %27 : vector<2x1x256xf32>
    %29 = arith.mulf %28, %15 : vector<2x1x256xf32>
    %cst_12 = arith.constant 0.0889789909 : f32
    %30 = vector.broadcast %cst_12 : f32 to vector<2x1x256xf32>
    %31 = arith.addf %29, %30 : vector<2x1x256xf32>
    %32 = arith.mulf %31, %15 : vector<2x1x256xf32>
    %cst_13 = arith.constant -0.214598805 : f32
    %33 = vector.broadcast %cst_13 : f32 to vector<2x1x256xf32>
    %34 = arith.addf %32, %33 : vector<2x1x256xf32>
    %35 = arith.mulf %34, %15 : vector<2x1x256xf32>
    %cst_14 = arith.constant 1.57079625 : f32
    %36 = vector.broadcast %cst_14 : f32 to vector<2x1x256xf32>
    %37 = arith.addf %35, %36 : vector<2x1x256xf32>
    %cst_15 = arith.constant 1.000000e+00 : f32
    %38 = vector.broadcast %cst_15 : f32 to vector<2x1x256xf32>
    %39 = arith.subf %38, %15 : vector<2x1x256xf32>
    %40 = math.sqrt %39 : vector<2x1x256xf32>
    %41 = arith.mulf %40, %37 : vector<2x1x256xf32>
    %cst_16 = arith.constant 0.000000e+00 : f32
    %42 = vector.broadcast %cst_16 : f32 to vector<2x1x256xf32>
    %43 = arith.cmpf olt, %14, %42 : vector<2x1x256xf32>
    %cst_17 = arith.constant 3.14159274 : f32
    %44 = vector.broadcast %cst_17 : f32 to vector<2x1x256xf32>
    %45 = arith.subf %44, %41 : vector<2x1x256xf32>
    %46 = arith.select %43, %45, %41 : vector<2x1x256xi1>, vector<2x1x256xf32>
    %47 = tpu.iota {dimensions = array<i32: 2>} : vector<2x1x256xi32>
    %c256_i32 = arith.constant 256 : i32
    %48 = arith.muli %arg1, %c256_i32 : i32
    %49 = vector.broadcast %48 : i32 to vector<2x1x256xi32>
    %50 = arith.addi %47, %49 : vector<2x1x256xi32>
    %51 = tpu.iota {dimensions = array<i32: 0>} : vector<2x1x256xi32>
    %c2_i32 = arith.constant 2 : i32
    %52 = arith.muli %arg0, %c2_i32 : i32
    %53 = vector.broadcast %52 : i32 to vector<2x1x256xi32>
    %54 = arith.addi %51, %53 : vector<2x1x256xi32>
    %c256_i32_18 = arith.constant 256 : i32
    %55 = vector.broadcast %c256_i32_18 : i32 to vector<2x1x256xi32>
    %56 = arith.cmpi slt, %50, %55 : vector<2x1x256xi32>
    %c2_i32_19 = arith.constant 2 : i32
    %57 = vector.broadcast %c2_i32_19 : i32 to vector<2x1x256xi32>
    %58 = arith.cmpi slt, %54, %57 : vector<2x1x256xi32>
    %59 = arith.andi %56, %58 : vector<2x1x256xi1>
    %60 = arith.cmpf one, %46, %46 : vector<2x1x256xf32>
    %cst_20 = arith.constant dense<true> : vector<2x1x256xi1>
    %61 = arith.xori %60, %cst_20 : vector<2x1x256xi1>
    %62 = arith.andi %59, %61 : vector<2x1x256xi1>
    %cst_21 = arith.constant 0.000000e+00 : f32
    %63 = vector.broadcast %cst_21 : f32 to vector<2x1x256xf32>
    %64 = arith.select %62, %46, %63 : vector<2x1x256xi1>, vector<2x1x256xf32>
    %65 = vector.shape_cast %64 : vector<2x1x256xf32> to vector<1x2x1x256xf32>
    %cst_22 = arith.constant dense<0.000000e+00> : vector<1xf32>
    %66 = vector.multi_reduction <add>, %65, %cst_22 [1, 2, 3] : vector<1x2x1x256xf32> to vector<1xf32>
    %67 = vector.shape_cast %66 : vector<1xf32> to vector<1x1x1x1xf32>
    %68 = vector.extract %67[0, 0, 0, 0] : f32 from vector<1x1x1x1xf32>
    %69 = arith.extui %62 : vector<2x1x256xi1> to vector<2x1x256xi32>
    %70 = arith.sitofp %69 : vector<2x1x256xi32> to vector<2x1x256xf32>
    %71 = vector.shape_cast %70 : vector<2x1x256xf32> to vector<1x2x1x256xf32>
    %cst_23 = arith.constant dense<0.000000e+00> : vector<1xf32>
    %72 = vector.multi_reduction <add>, %71, %cst_23 [1, 2, 3] : vector<1x2x1x256xf32> to vector<1xf32>
    %73 = vector.shape_cast %72 : vector<1xf32> to vector<1x1x1x1xf32>
    %74 = vector.extract %73[0, 0, 0, 0] : f32 from vector<1x1x1x1xf32>
    %75 = vector.broadcast %68 : f32 to vector<1x1x1x128xf32>
    %c0_24 = arith.constant 0 : index
    %c0_25 = arith.constant 0 : index
    %c0_26 = arith.constant 0 : index
    %c0_27 = arith.constant 0 : index
    %76 = vector.load %arg4[%c0_24, %c0_25, %c0_26, %c0_27] : memref<1x1x1x128xf32, #tpu.memory_space<vmem>>, vector<1x1x1x128xf32>
    tpu.vector_store %arg4[%c0_24, %c0_25, %c0_26, %c0_27], %75 {strides = array<i32>} : memref<1x1x1x128xf32, #tpu.memory_space<vmem>>, vector<1x1x1x128xf32>,
    %77 = vector.broadcast %74 : f32 to vector<1x1x1x128xf32>
    %c0_28 = arith.constant 0 : index
    %c0_29 = arith.constant 0 : index
    %c0_30 = arith.constant 0 : index
    %c0_31 = arith.constant 0 : index
    %78 = vector.load %arg5[%c0_28, %c0_29, %c0_30, %c0_31] : memref<1x1x1x128xf32, #tpu.memory_space<vmem>>, vector<1x1x1x128xf32>
    tpu.vector_store %arg5[%c0_28, %c0_29, %c0_30, %c0_31], %77 {strides = array<i32>} : memref<1x1x1x128xf32, #tpu.memory_space<vmem>>, vector<1x1x1x128xf32>,
    return
  }
  func.func @transform_0(%arg0: i32, %arg1: i32) -> (i32, i32, i32) {
    %c0_i32 = arith.constant 0 : i32
    %c0_i32_0 = arith.constant 0 : i32
    return %arg0, %c0_i32, %arg1 : i32, i32, i32
  }
  func.func @transform_1(%arg0: i32, %arg1: i32) -> (i32, i32, i32) {
    %c0_i32 = arith.constant 0 : i32
    %c0_i32_0 = arith.constant 0 : i32
    return %arg0, %c0_i32, %arg1 : i32, i32, i32
  }
  func.func @transform_2(%arg0: i32, %arg1: i32) -> (i32, i32, i32, i32) {
    %c0_i32 = arith.constant 0 : i32
    %c0_i32_0 = arith.constant 0 : i32
    %c0_i32_1 = arith.constant 0 : i32
    return %arg0, %arg1, %c0_i32, %c0_i32_0 : i32, i32, i32, i32
  }
  func.func @transform_3(%arg0: i32, %arg1: i32) -> (i32, i32, i32, i32) {
    %c0_i32 = arith.constant 0 : i32
    %c0_i32_0 = arith.constant 0 : i32
    %c0_i32_1 = arith.constant 0 : i32
    return %arg0, %arg1, %c0_i32, %c0_i32_0 : i32, i32, i32, i32
  }
}

</mosaic_0001>

<bundles_post_ra>
// kernel: spectral_angle_mapper.1
= control target key start
LH: loop header
LB: loop body
LE: loop exit
PB: predicated region body
PF: predicated region fallthrough
CT: control target
= control target key end

     0   :  { %vm25_vm0 = vcmask 1043456   ;;  %vm284_vm14 = vcmask 1040384   ;;  %s533_s0 = inlined_call_operand.vmem [shape: f32[2,4,256], index: 0, kind: input, shape index: {}]   ;;  %s534_s1 = inlined_call_operand.vmem [shape: f32[2,4,256], index: 1, kind: input, shape index: {}]   ;;  %s535_s2 = inlined_call_operand.vmem [shape: f32[1,1,1,128], index: 2, kind: output, shape index: {0}]   ;;  %s536_s3 = inlined_call_operand.vmem [shape: f32[1,1,1,128], index: 3, kind: output, shape index: {1}]  }
   0x1   :  { %v13_v0 = vld [vmem:[%s533_s0] sm:$0xff]  ;;  %v14_v1 = vld [vmem:[%s533_s0 + $0x8] sm:$0xff] }
   0x2   :  { %v54_v2 = vmul.f32 %v13_v0, %v13_v0  ;;  %v55_v3 = vmul.f32 %v14_v1, %v14_v1  ;;  %v15_v10 = vld [vmem:[%s534_s1] sm:$0xff]  ;;  %v16_v13 = vld [vmem:[%s534_s1 + $0x8] sm:$0xff] }
   0x3   :  { %v17_v14 = vmul.f32 %v15_v10, %v13_v0  ;;  %v18_v17 = vmul.f32 %v16_v13, %v14_v1  ;;  %v90_v26 = vmul.f32 %v15_v10, %v15_v10  ;;  %v91_v29 = vmul.f32 %v16_v13, %v16_v13 }
   0x4   :  { %v58_v4 = vcombine.high %v54_v2, %v54_v2  ;;  %v62_v5 = vsel %vm25_vm0, %v54_v2, 0.0  ;;  %v59_v6 = vcombine.high %v55_v3, %v55_v3  ;;  %v76_v12 = vsel %vm25_vm0, %v55_v3, 0.0 }
   0x5   :  { %v63_v7 = vrot.slane %v62_v5, 4  ;;  %v77_v16 = vrot.slane %v76_v12, 4  ;;  %v21_v23 = vcombine.high %v17_v14, %v17_v14  ;;  %v26_v24 = vsel %vm25_vm0, %v17_v14, 0.0 }
   0x6   :  { %v69_v8 = vsel %vm25_vm0, %v58_v4, 0.0  ;;  %v83_v18 = vsel %vm25_vm0, %v59_v6, 0.0  ;;  %v22_v27 = vcombine.high %v18_v17, %v18_v17  ;;  %v27_v31 = vrot.slane %v26_v24, 4 }
   0x7   :  { %v70_v9 = vrot.slane %v69_v8, 4  ;;  %v64_v11 = vadd.f32 %v63_v7, %v62_v5  ;;  %v78_v20 = vadd.f32 %v77_v16, %v76_v12  ;;  %v84_v22 = vrot.slane %v83_v18, 4 }
   0x8   :  { %v33_v34 = vsel %vm25_vm0, %v21_v23, 0.0  ;;  %v40_v35 = vsel %vm25_vm0, %v18_v17, 0.0  ;;  %v94_v37 = vcombine.high %v90_v26, %v90_v26  ;;  %v47_v38 = vsel %vm25_vm0, %v22_v27, 0.0 }
   0x9   :  { %v71_v15 = vadd.f32 %v70_v9, %v69_v8  ;;  %v65_v19 = vrot.slane %v64_v11, 2  ;;  %v79_v25 = vrot.slane %v78_v20, 2  ;;  %v85_v28 = vadd.f32 %v84_v22, %v83_v18 }
   0xa   :  { %v95_v40 = vcombine.high %v91_v29, %v91_v29  ;;  %v98_v41 = vsel %vm25_vm0, %v90_v26, 0.0  ;;  %v105_v44 = vsel %vm25_vm0, %v94_v37, 0.0  ;;  %v112_v45 = vsel %vm25_vm0, %v91_v29, 0.0 }
   0xb   :  { %v72_v21 = vrot.slane %v71_v15, 2  ;;  %v66_v30 = vadd.f32 %v65_v19, %v64_v11  ;;  %v86_v33 = vrot.slane %v85_v28, 2  ;;  %v80_v36 = vadd.f32 %v79_v25, %v78_v20 }
   0xc   :  { %v99_v43 = vrot.slane %v98_v41, 4  ;;  %v106_v47 = vrot.slane %v105_v44, 4  ;;  %v113_v48 = vrot.slane %v112_v45, 4  ;;  %v119_v49 = vsel %vm25_vm0, %v95_v40, 0.0 }
   0xd   :  { %v73_v32 = vadd.f32 %v72_v21, %v71_v15  ;;  %v87_v39 = vadd.f32 %v86_v33, %v85_v28  ;;  %v67_v42 = vrot.slane %v66_v30, 1  ;;  %v34_v50 = vrot.slane %v33_v34, 4 }
   0xe   :  { %v81_v51 = vrot.slane %v80_v36, 1  ;;  %v100_v52 = vadd.f32 %v99_v43, %v98_v41  ;;  %v120_v53 = vrot.slane %v119_v49, 4  ;;  %v41_v54 = vrot.slane %v40_v35, 4 }
   0xf   :  { %v74_v46 = vrot.slane %v73_v32, 1  ;;  %v88_v55 = vrot.slane %v87_v39, 1  ;;  %v107_v56 = vadd.f32 %v106_v47, %v105_v44  ;;  %v114_v57 = vadd.f32 %v113_v48, %v112_v45 }
  0x10   :  { %v48_v58 = vrot.slane %v47_v38, 4  ;;  %v68_v59 = vadd.f32 %v67_v42, %v66_v30  ;;  %v101_v60 = vrot.slane %v100_v52, 2  ;;  %v121_v61 = vadd.f32 %v120_v53, %v119_v49 }
  0x11   :  { %v28_v62 = vadd.f32 %v27_v31, %v26_v24  ;;  %v75_v63 = vadd.f32 %v74_v46, %v73_v32  ;;  %v108_v0 = vrot.slane %v107_v56, 2  ;;  %v115_v1 = vrot.slane %v114_v57, 2 }
  0x12   :  { %v35_v2 = vadd.f32 %v34_v50, %v33_v34  ;;  %v82_v3 = vadd.f32 %v81_v51, %v80_v36  ;;  %v102_v4 = vadd.f32 %v101_v60, %v100_v52  ;;  %v122_v5 = vrot.slane %v121_v61, 2 }
  0x13   :  { %v42_v6 = vadd.f32 %v41_v54, %v40_v35  ;;  %v89_v7 = vadd.f32 %v88_v55, %v87_v39  ;;  %v109_v8 = vadd.f32 %v108_v0, %v107_v56  ;;  %v116_v9 = vadd.f32 %v115_v1, %v114_v57 }
  0x14   :  { %v49_v10 = vadd.f32 %v48_v58, %v47_v38  ;;  %v103_v11 = vrot.slane %v102_v4, 1  ;;  %v123_v12 = vadd.f32 %v122_v5, %v121_v61  ;;  %347 = vrsqrt.f32 %v68_v59 }
  0x15   :  { %v29_v13 = vrot.slane %v28_v62, 2  ;;  %v110_v14 = vrot.slane %v109_v8, 1  ;;  %v117_v15 = vrot.slane %v116_v9, 1  ;;  %349 = vrsqrt.f32 %v75_v63 }
  0x16   :  { %v36_v16 = vrot.slane %v35_v2, 2  ;;  %v104_v17 = vadd.f32 %v103_v11, %v102_v4  ;;  %v124_v18 = vrot.slane %v123_v12, 1  ;;  %351 = vrsqrt.f32 %v82_v3 }
  0x17   :  { %v43_v19 = vrot.slane %v42_v6, 2  ;;  %v111_v20 = vadd.f32 %v110_v14, %v109_v8  ;;  %v118_v21 = vadd.f32 %v117_v15, %v116_v9  ;;  %353 = vrsqrt.f32 %v89_v7 }
  0x18   :  { %v50_v22 = vrot.slane %v49_v10, 2  ;;  %v125_v23 = vadd.f32 %v124_v18, %v123_v12  ;;  %355 = vrsqrt.f32 %v104_v17  ;;  %v30_v24 = vadd.f32 %v29_v13, %v28_v62 }
  0x19   :  { %357 = vrsqrt.f32 %v111_v20  ;;  %v37_v25 = vadd.f32 %v36_v16, %v35_v2  ;;  %v44_v26 = vadd.f32 %v43_v19, %v42_v6  ;;  %vm371_vm0 = vmmov 1  }
  0x1a   :  { %359 = vrsqrt.f32 %v118_v21  ;;  %v51_v27 = vadd.f32 %v50_v22, %v49_v10  ;;  %v31_v28 = vrot.slane %v30_v24, 1 }
  0x1b   :  { %361 = vrsqrt.f32 %v125_v23  ;;  %v38_v30 = vrot.slane %v37_v25, 1  ;;  %v45_v32 = vrot.slane %v44_v26, 1 }
  0x1c   :  { %v52_v34 = vrot.slane %v51_v27, 1  ;;  %v32_v36 = vadd.f32 %v31_v28, %v30_v24 }
  0x1d   :  { %v39_v38 = vadd.f32 %v38_v30, %v37_v25  ;;  %v46_v40 = vadd.f32 %v45_v32, %v44_v26 }
  0x1e   :  { %v348_v29 = vpop.eup %347  ;;  %v53_v43 = vadd.f32 %v52_v34, %v51_v27 }
  0x1f   :  { %v350_v31 = vpop.eup %349 }
  0x20   :  { %v352_v33 = vpop.eup %351 }
  0x21   :  { %v354_v35 = vpop.eup %353 }
  0x22   :  { %v356_v37 = vpop.eup %355 }
  0x23   :  { %v358_v39 = vpop.eup %357  ;;  %v134_v41 = vmul.f32 %v356_v37, %v348_v29 }
  0x24   :  { %v360_v42 = vpop.eup %359  ;;  %v135_v44 = vmul.f32 %v358_v39, %v350_v31 }
  0x25   :  { %v362_v45 = vpop.eup %361  ;;  %v136_v46 = vmul.f32 %v360_v42, %v352_v33  ;;  %v417_v47 = vmul.f32 %v134_v41, %v32_v36 }
  0x26   :  { %v137_v48 = vmul.f32 %v362_v45, %v354_v35  ;;  %v419_v49 = vmul.f32 %v135_v44, %v39_v38 }
  0x27   :  { %v421_v50 = vmul.f32 %v136_v46, %v46_v40  ;;  %v424_v51 = vand.u32 2147483647, %v417_v47  ;;  %vm238_vm9 = vcmp.lt.f32.partialorder %v417_v47, 0.0 }
  0x28   :  { %v426_v52 = vmul.f32 %v137_v48, %v53_v43  ;;  %v429_v53 = vand.u32 2147483647, %v419_v49  ;;  %vm239_vm10 = vcmp.lt.f32.partialorder %v419_v49, 0.0 }
  0x29   :  { %v432_v54 = vand.u32 2147483647, %v421_v50  ;;  %v146_v55 = vmul.f32 -0.0012624911, %v424_v51  ;;  %v440_v58 = vsub.f32 1.0, %v424_v51  ;;  %vm240_vm11 = vcmp.lt.f32.partialorder %v421_v50, 0.0 }
  0x2a   :  { %v436_v56 = vand.u32 2147483647, %v426_v52  ;;  %v147_v57 = vmul.f32 -0.0012624911, %v429_v53  ;;  %v444_v61 = vsub.f32 1.0, %v429_v53  ;;  %vm241_vm12 = vcmp.lt.f32.partialorder %v426_v52, 0.0 }
  0x2b   :  { %v148_v59 = vmul.f32 -0.0012624911, %v432_v54  ;;  %v150_v60 = vadd.f32 0.00667009, %v146_v55  ;;  %v448_v0 = vsub.f32 1.0, %v432_v54  ;;  %363 = vrsqrt.f32 %v440_v58 }
  0x2c   :  { %v149_v62 = vmul.f32 -0.0012624911, %v436_v56  ;;  %v151_v63 = vadd.f32 0.00667009, %v147_v57  ;;  %v453_v5 = vsub.f32 1.0, %v436_v56  ;;  %365 = vrsqrt.f32 %v444_v61 }
  0x2d   :  { %v152_v1 = vadd.f32 0.00667009, %v148_v59  ;;  %v154_v2 = vmul.f32 %v150_v60, %v424_v51  ;;  %367 = vrsqrt.f32 %v448_v0  ;;  %vm208_vm1 = vcmp.eq.f32.partialorder %v440_v58, inf }
  0x2e   :  { %v153_v3 = vadd.f32 0.00667009, %v149_v62  ;;  %v155_v4 = vmul.f32 %v151_v63, %v429_v53  ;;  %369 = vrsqrt.f32 %v453_v5  ;;  %vm210_vm2 = vcmp.eq.f32.partialorder %v440_v58, 0.0 }
  0x2f   :  { %v156_v6 = vmul.f32 %v152_v1, %v432_v54  ;;  %v158_v7 = vadd.f32 -0.017088126, %v154_v2  ;;  %v211_v30 = vand.u32 2147483648, %v440_v58  ;;  %vm215_vm3 = vcmp.eq.f32.partialorder %v444_v61, inf }
  0x30   :  { %v157_v8 = vmul.f32 %v153_v3, %v436_v56  ;;  %v159_v9 = vadd.f32 -0.017088126, %v155_v4  ;;  %vm217_vm4 = vcmp.eq.f32.partialorder %v444_v61, 0.0  ;;  %v218_v37 = vand.u32 2147483648, %v444_v61 }
  0x31   :  { %v160_v10 = vadd.f32 -0.017088126, %v156_v6  ;;  %v162_v11 = vmul.f32 %v158_v7, %v424_v51  ;;  %vm222_vm5 = vcmp.eq.f32.partialorder %v448_v0, inf  ;;  %vm224_vm6 = vcmp.eq.f32.partialorder %v448_v0, 0.0 }
  0x32   :  { %v161_v12 = vadd.f32 -0.017088126, %v157_v8  ;;  %v163_v13 = vmul.f32 %v159_v9, %v429_v53  ;;  %v225_v48 = vand.u32 2147483648, %v448_v0  ;;  %vm229_vm7 = vcmp.eq.f32.partialorder %v453_v5, inf }
  0x33   :  { %v164_v14 = vmul.f32 %v160_v10, %v432_v54  ;;  %v166_v15 = vadd.f32 0.03089188, %v162_v11  ;;  %vm231_vm8 = vcmp.eq.f32.partialorder %v453_v5, 0.0  ;;  %v232_v6 = vand.u32 2147483648, %v453_v5 }
  0x34   :  { %v165_v16 = vmul.f32 %v161_v12, %v436_v56  ;;  %v167_v17 = vadd.f32 0.03089188, %v163_v13 }
  0x35   :  { %v168_v18 = vadd.f32 0.03089188, %v164_v14  ;;  %v170_v19 = vmul.f32 %v166_v15, %v424_v51  ;;  %v364_v24 = vpop.eup %363 }
  0x36   :  { %v169_v20 = vadd.f32 0.03089188, %v165_v16  ;;  %v171_v21 = vmul.f32 %v167_v17, %v429_v53  ;;  %v366_v27 = vpop.eup %365  ;;  %v207_v36 = vmul.f32 %v364_v24, %v440_v58 }
  0x37   :  { %v172_v22 = vmul.f32 %v168_v18, %v432_v54  ;;  %v174_v23 = vadd.f32 -0.050174303, %v170_v19  ;;  %v368_v31 = vpop.eup %367  ;;  %v214_v41 = vmul.f32 %v366_v27, %v444_v61 }
  0x38   :  { %v173_v25 = vmul.f32 %v169_v20, %v436_v56  ;;  %v175_v26 = vadd.f32 -0.050174303, %v171_v21  ;;  %v370_v38 = vpop.eup %369  ;;  %v221_v44 = vmul.f32 %v368_v31, %v448_v0  ;;  %v209_v60 = vsel %vm208_vm1, %v440_v58, %v207_v36 }
  0x39   :  { %v176_v28 = vadd.f32 -0.050174303, %v172_v22  ;;  %v178_v29 = vmul.f32 %v174_v23, %v424_v51  ;;  %v228_v55 = vmul.f32 %v370_v38, %v453_v5  ;;  %v216_v1 = vsel %vm215_vm3, %v444_v61, %v214_v41 }
  0x3a   :  { %v177_v32 = vadd.f32 -0.050174303, %v173_v25  ;;  %v179_v33 = vmul.f32 %v175_v26, %v429_v53  ;;  %v223_v4 = vsel %vm222_vm5, %v448_v0, %v221_v44  ;;  %v212_v9 = vsel %vm210_vm2, %v211_v30, %v209_v60 }
  0x3b   :  { %v180_v34 = vmul.f32 %v176_v28, %v432_v54  ;;  %v182_v35 = vadd.f32 0.08897899, %v178_v29  ;;  %v230_v10 = vsel %vm229_vm7, %v453_v5, %v228_v55  ;;  %v226_v15 = vsel %vm224_vm6, %v225_v48, %v223_v4 }
  0x3c   :  { %v181_v39 = vmul.f32 %v177_v32, %v436_v56  ;;  %v183_v40 = vadd.f32 0.08897899, %v179_v33  ;;  %v372_v23 = vmov 0.0  }
  0x3d   :  { %v184_v42 = vadd.f32 0.08897899, %v180_v34  ;;  %v186_v43 = vmul.f32 %v182_v35, %v424_v51 }
  0x3e   :  { %v185_v45 = vadd.f32 0.08897899, %v181_v39  ;;  %v187_v46 = vmul.f32 %v183_v40, %v429_v53 }
  0x3f   :  { %v188_v57 = vmul.f32 %v184_v42, %v432_v54  ;;  %v190_v59 = vadd.f32 -0.2145988, %v186_v43 }
  0x40   :  { %v189_v62 = vmul.f32 %v185_v45, %v436_v56  ;;  %v191_v63 = vadd.f32 -0.2145988, %v187_v46 }
  0x41   :  { %v192_v2 = vadd.f32 -0.2145988, %v188_v57  ;;  %v194_v3 = vmul.f32 %v190_v59, %v424_v51  ;;  %v219_v51 = vsel %vm217_vm4, %v218_v37, %v216_v1 }
  0x42   :  { %v193_v7 = vadd.f32 -0.2145988, %v189_v62  ;;  %v195_v8 = vmul.f32 %v191_v63, %v429_v53  ;;  %v233_v53 = vsel %vm231_vm8, %v232_v6, %v230_v10 }
  0x43   :  { %v196_v11 = vmul.f32 %v192_v2, %v432_v54  ;;  %v198_v12 = vadd.f32 1.5707963, %v194_v3 }
  0x44   :  { %v197_v13 = vmul.f32 %v193_v7, %v436_v56  ;;  %v199_v14 = vadd.f32 1.5707963, %v195_v8 }
  0x45   :  { %v200_v16 = vadd.f32 1.5707963, %v196_v11  ;;  %v234_v58 = vmul.f32 %v212_v9, %v198_v12 }
  0x46   :  { %v201_v17 = vadd.f32 1.5707963, %v197_v13  ;;  %v235_v18 = vmul.f32 %v219_v51, %v199_v14 }
  0x47   :  { %v236_v54 = vmul.f32 %v226_v15, %v200_v16  ;;  %v242_v61 = vsub.f32 3.1415927, %v234_v58 }
  0x48   :  { %v237_v19 = vmul.f32 %v233_v53, %v201_v17  ;;  %v243_v56 = vsub.f32 3.1415927, %v235_v18 }
  0x49   :  { %v244_v0 = vsub.f32 3.1415927, %v236_v54  ;;  %v246_v20 = vsel %vm238_vm9, %v242_v61, %v234_v58 }
  0x4a   :  { %v245_v21 = vsub.f32 3.1415927, %v237_v19  ;;  %v247_v5 = vsel %vm239_vm10, %v243_v56, %v235_v18  ;;  %vm268_vm13 = vcmp.ne.f32.partialorder %v246_v20, %v246_v20 }
  0x4b   :  { %v248_v22 = vsel %vm240_vm11, %v244_v0, %v236_v54  ;;  %vm269_vm15 = vcmp.ne.f32.partialorder %v247_v5, %v247_v5  ;;  %vm272_vm1 = vmxor %vm268_vm13, %vm371_vm0 }
  0x4c   :  { %v249_v47 = vsel %vm241_vm12, %v245_v21, %v237_v19  ;;  %vm270_vm2 = vcmp.ne.f32.partialorder %v248_v22, %v248_v22  ;;  %vm273_vm3 = vmxor %vm269_vm15, %vm371_vm0  ;;  %v280_v49 = vsel %vm272_vm1, %v246_v20, 0.0  ;;  %v337_v24 = vsel %vm272_vm1, 1.0, %v372_v23 }
  0x4d   :  { %vm271_vm4 = vcmp.ne.f32.partialorder %v249_v47, %v249_v47  ;;  %vm274_vm5 = vmxor %vm270_vm2, %vm371_vm0  ;;  %v281_v50 = vsel %vm273_vm3, %v247_v5, 0.0  ;;  %v285_v52 = vsel %vm284_vm14, %v280_v49, 0.0  ;;  %v338_v25 = vsel %vm273_vm3, 1.0, %v372_v23 }
  0x4e   :  { %vm275_vm6 = vmxor %vm271_vm4, %vm371_vm0  ;;  %v282_v26 = vsel %vm274_vm5, %v248_v22, 0.0  ;;  %v286_v27 = vsel %vm284_vm14, %v281_v50, 0.0  ;;  %v339_v28 = vsel %vm274_vm5, 1.0, %v372_v23  ;;  %v309_v29 = vsel %vm284_vm14, %v337_v24, 0.0 }
  0x4f   :  { %v283_v30 = vsel %vm275_vm6, %v249_v47, 0.0  ;;  %v287_v31 = vadd.f32 %v286_v27, %v285_v52  ;;  %v288_v32 = vsel %vm284_vm14, %v282_v26, 0.0  ;;  %v340_v33 = vsel %vm275_vm6, 1.0, %v372_v23 }
  0x50   :  { %v290_v34 = vsel %vm284_vm14, %v283_v30, 0.0  ;;  %v310_v35 = vsel %vm284_vm14, %v338_v25, 0.0  ;;  %v312_v36 = vsel %vm284_vm14, %v339_v28, 0.0  ;;  %v314_v39 = vsel %vm284_vm14, %v340_v33, 0.0 }
  0x51   :  { %v289_v37 = vadd.f32 %v288_v32, %v287_v31  ;;  %v311_v38 = vadd.f32 %v310_v35, %v309_v29 }
  0x53   :  { %v291_v40 = vadd.f32 %v290_v34, %v289_v37  ;;  %v313_v41 = vadd.f32 %v312_v36, %v311_v38 }
  0x55   :  { %292 = vadd.xlane.f32.xlu0 %v291_v40  ;;  %v315_v42 = vadd.f32 %v314_v39, %v313_v41 }
  0x59   :  { %316 = vadd.xlane.f32.xlu0 %v315_v42 }
  0xe2   :  { %v293_v43 = vpop.xlane.xlu0 %292 }
  0xe3   :  { %v294_v44 = vrot.slane %v293_v43, 4 }
  0xe5   :  { %v295_v45 = vadd.f32 %v294_v44, %v293_v43 }
  0xe6   :  { %v317_v46 = vpop.xlane.xlu0 %316 }
  0xe7   :  { %v296_v48 = vrot.slane %v295_v45, 2  ;;  %v318_v55 = vrot.slane %v317_v46, 4 }
  0xe9   :  { %v319_v57 = vadd.f32 %v318_v55, %v317_v46  ;;  %v297_v59 = vadd.f32 %v296_v48, %v295_v45 }
  0xeb   :  { %v320_v60 = vrot.slane %v319_v57, 2  ;;  %v298_v62 = vrot.slane %v297_v59, 1 }
  0xed   :  { %v321_v63 = vadd.f32 %v320_v60, %v319_v57  ;;  %v299_v1 = vadd.f32 %v298_v62, %v297_v59 }
  0xef   :  { %341 = vpush %v299_v1  ;;  %v322_v2 = vrot.slane %v321_v63, 1 }
  0xf1   :  { %v323_v3 = vadd.f32 %v322_v2, %v321_v63 }
  0xf3   :  { %343 = vpush %v323_v3 }
 0x120   :  { %s342_s1 = spop %341 }
 0x121   :  { %v325_v4 = vstv %s342_s1 }
 0x122   :  { %326 = vst [vmem:[%s535_s2] sm:$0x1] %v325_v4 }
 0x124   :  { %s344_s21 = spop %343 }
 0x125   :  { %v327_v6 = vstv %s344_s21 }
 0x126   :  { %328 = vst [vmem:[%s536_s3] sm:$0x1] %v327_v6 }

</bundles_post_ra>
